<compile_context>
chip_gen: v7x
topology: tpu7x:2x2x1
jax: 0.10.0
libtpu: 0.0.40
codegen_flags: <defaults>
</compile_context>

<pallas_src>
import numpy as np
import jax
import jax.numpy as jnp
from jax.experimental import pallas as pl
from jax.experimental.pallas import tpu as pltpu


def _round_up(v, m):
    return ((v + m - 1) // m) * m


# ----------------------------- Pallas kernel ------------------------------ #
def _binary_wrapper_kernel(x_ref, w_ref, b_ref, o_ref, acc_ref):
    # x: (tm, tk)  w: (tk, tn)  b: (1, tn)  o: (tm, tn)  acc: (tm, tn) f32
    k = pl.program_id(2)

    @pl.when(k == 0)
    def _():
        acc_ref[...] = jnp.zeros_like(acc_ref)

    acc_ref[...] += jnp.dot(x_ref[...], w_ref[...],
                            preferred_element_type=jnp.float32)

    @pl.when(k == pl.num_programs(2) - 1)
    def _():
        logits = acc_ref[...] + b_ref[...]
        # sigmoid: exp on the EUP + approximate reciprocal on the EUP keeps the
        # epilogue off the VALU (which contends with MXU result pops).
        probs = pl.reciprocal(1.0 + jnp.exp(-logits), approx=True)
        o_ref[...] = probs.astype(o_ref.dtype)


def binary_wrapper_forward(x, w_combined, b_combined, *,
                           tm=256, tn=256, tk=512, compute_dtype=None):
    """Fused (matmul + bias + sigmoid) over the combined concept weight matrix.

    Pads batch to 8-sublane multiples and concepts/features to 128-lane
    multiples, runs a tiled K-reduction matmul with an f32 VMEM accumulator,
    and slices the padding off the result.
    """
    B, F = x.shape
    C = w_combined.shape[1]
    out_dtype = x.dtype

    # Shrink default tiles for small problems while keeping (8, 128) alignment.
    tm = min(tm, _round_up(B, 8))
    tn = min(tn, _round_up(C, 128))
    tk = min(tk, _round_up(F, 128))
    Bp, Fp, Cp = _round_up(B, tm), _round_up(F, tk), _round_up(C, tn)

    x_p = jnp.pad(x, ((0, Bp - B), (0, Fp - F)))
    w_p = jnp.pad(w_combined, ((0, Fp - F), (0, Cp - C)))
    b_p = jnp.pad(b_combined.reshape(1, C).astype(jnp.float32),
                  ((0, 0), (0, Cp - C)))

    if compute_dtype is not None:  # e.g. jnp.bfloat16 on v6e/v7x at real sizes
        x_p = x_p.astype(compute_dtype)
        w_p = w_p.astype(compute_dtype)

    grid = (Bp // tm, Cp // tn, Fp // tk)

    out_p = pl.pallas_call(
        _binary_wrapper_kernel,
        out_shape=jax.ShapeDtypeStruct((Bp, Cp), out_dtype),
        grid_spec=pltpu.PrefetchScalarGridSpec(
            num_scalar_prefetch=0,
            grid=grid,
            in_specs=[
                pl.BlockSpec((tm, tk), lambda i, j, k: (i, k)),   # x tile
                pl.BlockSpec((tk, tn), lambda i, j, k: (k, j)),   # W tile
                pl.BlockSpec((1, tn), lambda i, j, k: (0, j)),    # bias row
            ],
            out_specs=pl.BlockSpec((tm, tn), lambda i, j, k: (i, j)),
            scratch_shapes=[pltpu.VMEM((tm, tn), jnp.float32)],
        ),
        compiler_params=pltpu.CompilerParams(
            dimension_semantics=("parallel", "parallel", "arbitrary"),
            vmem_limit_bytes=32 * 1024 * 1024,  # safe on v5e/v6e/v7x for these tiles
        ),
    )(x_p, w_p, b_p)

    return out_p[:B, :C]


# --------------------------- parameter assembly ---------------------------- #
def build_binary_wrapper_params(key, in_features, n_concepts, components, free_ids):
    """Deterministically init each wrapped head (Linear+Sigmoid) and the free-
    concepts layer, then scatter their weight columns into a single
    (in_features, n_concepts) matrix + (n_concepts,) bias."""
    W = jnp.zeros((in_features, n_concepts), dtype=jnp.float32)
    b = jnp.zeros((n_concepts,), dtype=jnp.float32)

    # wrapped_heads: one Linear(in_features, len(comp)) per connected component
    for comp_cols in components:
        key, kw, kb = jax.random.split(key, 3)
        n_out = len(comp_cols)
        w_head = jax.random.normal(kw, (in_features, n_out), jnp.float32) * 0.1
        b_head = jax.random.normal(kb, (n_out,), jnp.float32) * 0.1
        cols = jnp.asarray(comp_cols, dtype=jnp.int32)
        W = W.at[:, cols].set(w_head)
        b = b.at[cols].set(b_head)

    # layer_free_concepts: Linear(in_features, len(free_ids)) + Sigmoid
    if len(free_ids) > 0:
        key, kw, kb = jax.random.split(key, 3)
        n_out = len(free_ids)
        w_free = jax.random.normal(kw, (in_features, n_out), jnp.float32) * 0.1
        b_free = jax.random.normal(kb, (n_out,), jnp.float32) * 0.1
        cols = jnp.asarray(free_ids, dtype=jnp.int32)
        W = W.at[:, cols].set(w_free)
        b = b.at[cols].set(b_free)

    return W, b


# ---------------------------------- main ----------------------------------- #
if __name__ == "__main__":
    # Small, forward-consistent shapes.
    batch = 2
    in_features = 32
    # concepts_order has 6 binary concepts; rules connect concepts {0,2} and {3};
    # concepts {1,4,5} are free (not mentioned by any rule).
    n_concepts = 6
    components = [[0, 2], [3]]          # self.components
    free_concepts_ids = [1, 4, 5]       # self.free_concepts_ids

    key = jax.random.PRNGKey(0)
    key, kx = jax.random.split(key)
    x = jax.random.normal(kx, (batch, in_features), jnp.float32)

    W, b = build_binary_wrapper_params(key, in_features, n_concepts,
                                       components, free_concepts_ids)

    out = binary_wrapper_forward(x, W, b)
    out = jax.block_until_ready(out)

    # Pure-JAX reference of the module forward (scatter form).
    ref = jnp.zeros((batch, n_concepts), jnp.float32)
    for comp_cols in components:
        cols = jnp.asarray(comp_cols, dtype=jnp.int32)
        ref = ref.at[:, cols].set(jax.nn.sigmoid(x @ W[:, cols] + b[cols]))
    if len(free_concepts_ids) > 0:
        cols = jnp.asarray(free_concepts_ids, dtype=jnp.int32)
        ref = ref.at[:, cols].set(jax.nn.sigmoid(x @ W[:, cols] + b[cols]))

    assert out.shape == (batch, n_concepts)
    # Tolerance accommodates the EUP approximate reciprocal (rel err ~1e-4)
    # used in the sigmoid epilogue; outputs live in [0, 1].
    np.testing.assert_allclose(np.asarray(out), np.asarray(ref),
                               rtol=2e-3, atol=2e-3)

    print("KERNEL_OK")
</pallas_src>

<mosaic_0001>
module attributes {stable_mosaic.version = 11 : i64} {
  func.func @_binary_wrapper_kernel(%arg0: i32, %arg1: i32, %arg2: i32, %arg3: memref<8x128xf32, #tpu.memory_space<vmem>>, %arg4: memref<128x128xf32, #tpu.memory_space<vmem>>, %arg5: memref<1x128xf32, #tpu.memory_space<vmem>>, %arg6: memref<8x128xf32, #tpu.memory_space<vmem>>, %arg7: memref<8x128xf32, #tpu.memory_space<vmem>>) attributes {dimension_semantics = [#tpu.dimension_semantics<parallel>, #tpu.dimension_semantics<parallel>, #tpu.dimension_semantics<arbitrary>], iteration_bounds = array<i64: 1, 1, 1>, scalar_prefetch = 0 : i64, scratch_operands = 1 : i64, tpu.core_type = #tpu.core_type<tc>, window_params = [{transform_indices = @transform_0, window_bounds = array<i64: 8, 128>}, {transform_indices = @transform_1, window_bounds = array<i64: 128, 128>}, {transform_indices = @transform_2, window_bounds = array<i64: 1, 128>}, {transform_indices = @transform_3, window_bounds = array<i64: 8, 128>}]} {
    %c0_i32 = arith.constant 0 : i32
    %0 = arith.cmpi eq, %arg2, %c0_i32 : i32
    %1 = arith.extui %0 : i1 to i32
    %c0_i32_0 = arith.constant 0 : i32
    %2 = arith.cmpi ne, %1, %c0_i32_0 : i32
    scf.if %2 {
      %cst_10 = arith.constant 0.000000e+00 : f32
      %12 = vector.broadcast %cst_10 : f32 to vector<8x128xf32>
      %c0_11 = arith.constant 0 : index
      %c0_12 = arith.constant 0 : index
      %13 = vector.load %arg7[%c0_11, %c0_12] : memref<8x128xf32, #tpu.memory_space<vmem>>, vector<8x128xf32>
      tpu.vector_store %arg7[%c0_11, %c0_12], %12 {strides = array<i32>} : memref<8x128xf32, #tpu.memory_space<vmem>>, vector<8x128xf32>,
    } else {
    }
    %c0 = arith.constant 0 : index
    %c0_1 = arith.constant 0 : index
    %3 = vector.load %arg7[%c0, %c0_1] : memref<8x128xf32, #tpu.memory_space<vmem>>, vector<8x128xf32>
    %c0_2 = arith.constant 0 : index
    %c0_3 = arith.constant 0 : index
    %4 = vector.load %arg3[%c0_2, %c0_3] : memref<8x128xf32, #tpu.memory_space<vmem>>, vector<8x128xf32>
    %c0_4 = arith.constant 0 : index
    %c0_5 = arith.constant 0 : index
    %5 = vector.load %arg4[%c0_4, %c0_5] : memref<128x128xf32, #tpu.memory_space<vmem>>, vector<128x128xf32>
    %cst = arith.constant dense<0.000000e+00> : vector<8x128xf32>
    %6 = tpu.matmul %4, %5, %cst {dimension_numbers = #tpu.dot_dimension_numbers<[1], [0], [0], [1], [0, 0, 1, 1], [], []>} : vector<8x128xf32>, vector<128x128xf32>, vector<8x128xf32> -> vector<8x128xf32>
    %7 = arith.addf %3, %6 : vector<8x128xf32>
    %c0_6 = arith.constant 0 : index
    %c0_7 = arith.constant 0 : index
    %8 = vector.load %arg7[%c0_6, %c0_7] : memref<8x128xf32, #tpu.memory_space<vmem>>, vector<8x128xf32>
    tpu.vector_store %arg7[%c0_6, %c0_7], %7 {strides = array<i32>} : memref<8x128xf32, #tpu.memory_space<vmem>>, vector<8x128xf32>,
    %c0_i32_8 = arith.constant 0 : i32
    %9 = arith.cmpi eq, %arg2, %c0_i32_8 : i32
    %10 = arith.extui %9 : i1 to i32
    %c0_i32_9 = arith.constant 0 : i32
    %11 = arith.cmpi ne, %10, %c0_i32_9 : i32
    scf.if %11 {
      %c0_10 = arith.constant 0 : index
      %c0_11 = arith.constant 0 : index
      %12 = vector.load %arg7[%c0_10, %c0_11] : memref<8x128xf32, #tpu.memory_space<vmem>>, vector<8x128xf32>
      %c0_12 = arith.constant 0 : index
      %c0_13 = arith.constant 0 : index
      %13 = vector.load %arg5[%c0_12, %c0_13] : memref<1x128xf32, #tpu.memory_space<vmem>>, vector<1x128xf32>
      %14 = vector.broadcast %13 : vector<1x128xf32> to vector<8x128xf32>
      %15 = arith.addf %12, %14 : vector<8x128xf32>
      %cst_14 = arith.constant 0.000000e+00 : f32
      %16 = vector.broadcast %cst_14 : f32 to vector<8x128xf32>
      %17 = arith.subf %16, %15 : vector<8x128xf32>
      %18 = math.exp %17 : vector<8x128xf32>
      %cst_15 = arith.constant 1.000000e+00 : f32
      %19 = vector.broadcast %cst_15 : f32 to vector<8x128xf32>
      %20 = arith.addf %19, %18 : vector<8x128xf32>
      %21 = tpu.reciprocal %20 {approx = true} : vector<8x128xf32> -> vector<8x128xf32>
      %c0_16 = arith.constant 0 : index
      %c0_17 = arith.constant 0 : index
      %22 = vector.load %arg6[%c0_16, %c0_17] : memref<8x128xf32, #tpu.memory_space<vmem>>, vector<8x128xf32>
      tpu.vector_store %arg6[%c0_16, %c0_17], %21 {strides = array<i32>} : memref<8x128xf32, #tpu.memory_space<vmem>>, vector<8x128xf32>,
    } else {
    }
    return
  }
  func.func @transform_0(%arg0: i32, %arg1: i32, %arg2: i32) -> (i32, i32) {
    %c0_i32 = arith.constant 0 : i32
    return %arg0, %arg2 : i32, i32
  }
  func.func @transform_1(%arg0: i32, %arg1: i32, %arg2: i32) -> (i32, i32) {
    %c0_i32 = arith.constant 0 : i32
    return %arg2, %arg1 : i32, i32
  }
  func.func @transform_2(%arg0: i32, %arg1: i32, %arg2: i32) -> (i32, i32) {
    %c0_i32 = arith.constant 0 : i32
    %c0_i32_0 = arith.constant 0 : i32
    return %c0_i32, %arg1 : i32, i32
  }
  func.func @transform_3(%arg0: i32, %arg1: i32, %arg2: i32) -> (i32, i32) {
    %c0_i32 = arith.constant 0 : i32
    return %arg0, %arg1 : i32, i32
  }
}

</mosaic_0001>

<bundles_post_ra>
// kernel: tpu_custom_call.1
= control target key start
LH: loop header
LB: loop body
LE: loop exit
PB: predicated region body
PF: predicated region fallthrough
CT: control target
= control target key end

     0   :  { %8 = vsyncpa [#allocation4], 0  ;;  %s405_s0 = inlined_call_operand.hbm [shape: f32[8,128], index: 0, kind: input, shape index: {}]   ;;  %s406_s1 = inlined_call_operand.hbm [shape: f32[128,128], index: 1, kind: input, shape index: {}]   ;;  %s407_s2 = inlined_call_operand.vmem [shape: f32[1,128], index: 2, kind: input, shape index: {}]   ;;  %s408_s3 = inlined_call_operand.hbm [shape: f32[8,128], index: 3, kind: output, shape index: {}]  }
   0x1   :  { %9 = vsyncpa [#allocation7], 0 }
   0x2   :  { %10 = vsyncpa [#allocation5], 0  ;;  %s331_s12 = smov [#allocation3]   ;;  %s332_s14 = smov [#allocation6]  }
   0x3   :  { %s17_s13 = sshll.u32 %s331_s12, 4  ;;  %s26_s15 = sshll.u32 %s332_s14, 4  ;;  %s18_s13 = int_to_ptr.vmem [resolvable:$true] %s17_s13  ;;  %s359_s15 = int_to_ptr.vmem [resolvable:$true] %s26_s15 }
   0x4   :  { %s259_s18 = scalar_lea.hbm %s405_s0, 128 }
   0x5   :  { %p260_p0 = scmp.ne.s32.totalorder %s405_s0, %s259_s18  ;;  %p263_p1 = scmp.lt.u32.totalorder %s259_s18, %s405_s0 }
   0x7   :  { %p265_p2 = pnand %p263_p1, %p260_p0 }
   0x9   :  { %268 = shalt.err (!%p265_p2)
}
   0xa   :  { %s269_s23 = scalar_lea.vmem %s18_s13, 128  ;;  %p274_p4 = scmp.lt.s32.totalorder %s18_s13, %s18_s13 }
   0xb   :  { %p270_p3 = scmp.ne.s32.totalorder %s18_s13, %s269_s23  ;;  %p275_p5 = scmp.lt.s32.totalorder %s269_s23, %s269_s23 }
   0xd   :  { %p276_p6 = por %p275_p5, %p274_p4 }
   0xf   :  { %p277_p7 = pnand %p276_p6, %p270_p3 }
  0x11   :  { %280 = shalt.err (!%p277_p7)
}
  0x12   :  { %20 = dma.hbm_to_vmem [thread:$0]  %s405_s0, 128, %s18_s13, [#allocation4]  }
  0x13   :  { %s281_s28 = scalar_lea.hbm %s406_s1, 2048 }
  0x14   :  { %p282_p8 = scmp.ne.s32.totalorder %s406_s1, %s281_s28  ;;  %p285_p9 = scmp.lt.u32.totalorder %s281_s28, %s406_s1 }
  0x16   :  { %p287_p10 = pnand %p285_p9, %p282_p8 }
  0x18   :  { %290 = shalt.err (!%p287_p10)
}
  0x19   :  { %s291_s6 = scalar_lea.vmem %s359_s15, 2048  ;;  %p296_p12 = scmp.lt.s32.totalorder %s359_s15, %s359_s15 }
  0x1a   :  { %p292_p11 = scmp.ne.s32.totalorder %s359_s15, %s291_s6  ;;  %p297_p13 = scmp.lt.s32.totalorder %s291_s6, %s291_s6 }
  0x1c   :  { %p298_p0 = por %p297_p13, %p296_p12 }
  0x1e   :  { %p299_p1 = pnand %p298_p0, %p292_p11 }
  0x20   :  { %302 = shalt.err (!%p299_p1)
}
  0x21   :  { %s333_s0 = smov 128   ;;  %s334_s7 = smov 8  }
  0x22   :  { %32 = dma.hbm_to_vmem [thread:$0]  %s406_s1, 2048, %s359_s15, [#allocation7], %s333_s0, %s333_s0, %s334_s7  }
  0x23   :  { %325 = dma.done.wait [#allocation4], 128  }
  0x24   :  { %326 = vsyncadd [#allocation4], 4294967168 }
  0x25   :  { %327 = dma.done.wait [#allocation7], 2048  }
  0x26   :  { %328 = vsyncadd [#allocation7], 4294965248  ;;  %v335_v0 = vmov 0.0|0.0   ;;  %vm336_vm0 = vmmov 0   ;;  %v337_v1 = vmov 0.0   ;;  %v48_v2 = vld [vmem:[#allocation6] sm:$0xff] }
  0x27   :  { %223 = vmatprep.subr.bf16.mxu0 %v335_v0  ;;  %220 = vmatprep.mubr.msk.f32.mxu0 %vm336_vm0, %v337_v1  ;;  %v49_v3 = vld [vmem:[#allocation6 + $0x8] sm:$0xff]  ;;  %v50_v4 = vld [vmem:[#allocation6 + $0x10] sm:$0xff]  ;;  %v51_v6 = vld [vmem:[#allocation6 + $0x18] sm:$0xff]  ;;  %s338_s11 = smov [#allocation8]  }
  0x28   :  { %v224_v5 = vpack.c.bf16 %v49_v3, %v48_v2  ;;  %v227_v7 = vpack.c.bf16 %v51_v6, %v50_v4  ;;  %v52_v8 = vld [vmem:[#allocation6 + $0x20] sm:$0xff]  ;;  %v53_v9 = vld [vmem:[#allocation6 + $0x28] sm:$0xff]  ;;  %v54_v11 = vld [vmem:[#allocation6 + $0x30] sm:$0xff]  ;;  %s160_s12 = sshll.u32 %s338_s11, 4  ;;  %s161_s12 = int_to_ptr.vmem [resolvable:$true] %s160_s12 }
  0x29   :  { %v230_v10 = vpack.c.bf16 %v53_v9, %v52_v8  ;;  %v55_v12 = vld [vmem:[#allocation6 + $0x38] sm:$0xff]  ;;  %v56_v14 = vld [vmem:[#allocation6 + $0x40] sm:$0xff]  ;;  %v57_v15 = vld [vmem:[#allocation6 + $0x48] sm:$0xff]  ;;  %s303_s13 = scalar_lea.vmem %s161_s12, 128  ;;  %p308_p3 = scmp.lt.s32.totalorder %s161_s12, %s161_s12 }
  0x2a   :  { %225 = vmatpush3.bf16.msra.mxu0 %v224_v5  ;;  %v233_v13 = vpack.c.bf16 %v55_v12, %v54_v11  ;;  %v236_v16 = vpack.c.bf16 %v57_v15, %v56_v14  ;;  %v58_v17 = vld [vmem:[#allocation6 + $0x50] sm:$0xff]  ;;  %v59_v18 = vld [vmem:[#allocation6 + $0x58] sm:$0xff]  ;;  %v60_v20 = vld [vmem:[#allocation6 + $0x60] sm:$0xff]  ;;  %p304_p2 = scmp.ne.s32.totalorder %s161_s12, %s303_s13  ;;  %p309_p4 = scmp.lt.s32.totalorder %s303_s13, %s303_s13 }
  0x2b   :  { %226 = vmatprep.subr.bf16.mxu0 %v335_v0  ;;  %v239_v19 = vpack.c.bf16 %v59_v18, %v58_v17  ;;  %v61_v21 = vld [vmem:[#allocation6 + $0x68] sm:$0xff]  ;;  %v62_v23 = vld [vmem:[#allocation6 + $0x70] sm:$0xff]  ;;  %v63_v24 = vld [vmem:[#allocation6 + $0x78] sm:$0xff] }
  0x2c   :  { %v242_v22 = vpack.c.bf16 %v61_v21, %v60_v20  ;;  %v245_v25 = vpack.c.bf16 %v63_v24, %v62_v23  ;;  %v47_v26 = vld [vmem:[#allocation3] sm:$0xff]  ;;  %p310_p5 = por %p309_p4, %p308_p3 }
  0x2d   :  { %v170_v27 = vld [vmem:[%s407_s2] ss:$0 sm:$0xff] }
  0x2e   :  { %228 = vmatpush3.bf16.msra.mxu0 %v227_v7  ;;  %p311_p6 = pnand %p310_p5, %p304_p2 }
  0x2f   :  { %229 = vmatprep.subr.bf16.mxu0 %v335_v0 }
  0x32   :  { %231 = vmatpush3.bf16.msra.mxu0 %v230_v10 }
  0x33   :  { %232 = vmatprep.subr.bf16.mxu0 %v335_v0 }
  0x36   :  { %234 = vmatpush3.bf16.msra.mxu0 %v233_v13 }
  0x37   :  { %235 = vmatprep.subr.bf16.mxu0 %v335_v0 }
  0x3a   :  { %237 = vmatpush3.bf16.msra.mxu0 %v236_v16 }
  0x3b   :  { %238 = vmatprep.subr.bf16.mxu0 %v335_v0 }
  0x3e   :  { %240 = vmatpush3.bf16.msra.mxu0 %v239_v19 }
  0x3f   :  { %241 = vmatprep.subr.bf16.mxu0 %v335_v0 }
  0x42   :  { %243 = vmatpush3.bf16.msra.mxu0 %v242_v22 }
  0x43   :  { %244 = vmatprep.subr.bf16.mxu0 %v335_v0 }
  0x46   :  { %246 = vmatpush3.bf16.msra.mxu0 %v245_v25 }
  0x49   :  { %221 = vmatmul.mubr.f32.vlgmr.msra.gmra.mrb[0].mxu0 %v47_v26 }
 0x11c   :  { %v130_v28 = vpop.f32.mrb[0].mxu0 }
 0x11d   :  { %v147_v29 = vadd.f32 %v170_v27, %v130_v28  ;;  %v222_v30 = vpop.f32.mrb[1].mxu0 }
 0x11f   :  { %v148_v31 = vsub.f32 0.0, %v147_v29 }
 0x121   :  { %v149_v32 = vmul.f32 1.442695, %v148_v31 }
 0x123   :  { %255 = vpow2.f32 %v149_v32 }
 0x12d   :  { %v256_v33 = vpop.eup %255 }
 0x12e   :  { %v151_v34 = vadd.f32 1.0, %v256_v33 }
 0x130   :  { %257 = vrcp.f32 %v151_v34 }
 0x13a   :  { %v258_v35 = vpop.eup %257 }
 0x13b   :  { %153 = vst [vmem:[#allocation8] sm:$0xff] %v258_v35 }
 0x13c   :  { %314 = shalt.err (!%p311_p6)
}
 0x13d   :  { %s315_s15 = scalar_lea.hbm %s408_s3, 128 }
 0x13e   :  { %p316_p7 = scmp.ne.s32.totalorder %s408_s3, %s315_s15  ;;  %p319_p8 = scmp.lt.u32.totalorder %s315_s15, %s408_s3 }
 0x140   :  { %p321_p9 = pnand %p319_p8, %p316_p7 }
 0x142   :  { %324 = shalt.err (!%p321_p9)
}
 0x143   :  { %163 = dma.vmem_to_hbm [thread:$0]  %s161_s12, 128, %s408_s3, [#allocation5]  }
 0x144   :  { %329 = dma.done.wait [#allocation5], 128  }
 0x145   :  { %330 = vsyncadd [#allocation5], 4294967168 }
 0x146   :  { %167 = vsyncpa [#allocation4], 1 }
 0x147   :  { %168 = vsyncpa [#allocation7], 1 }
 0x148   :  { %169 = vsyncpa [#allocation5], 1 }

</bundles_post_ra>
